<compile_context>
chip_gen: v6e
topology: v6e:2x2x1
jax: 0.10.0
libtpu: 0.0.40
codegen_flags: <defaults>
</compile_context>

<pallas_src>
import functools

import jax
import jax.numpy as jnp
from jax.experimental import pallas as pl
from jax.experimental.pallas import tpu as pltpu


# ----------------------------- Pallas kernel ------------------------------

def _proj_kernel(x_ref, w_ref, o_ref, acc_ref):
    """One (tm, tn) output tile; K reduced over the innermost grid axis."""
    @pl.when(pl.program_id(2) == 0)
    def _():
        acc_ref[...] = jnp.zeros_like(acc_ref)

    acc_ref[...] += jnp.dot(
        x_ref[...], w_ref[...], preferred_element_type=jnp.float32)

    @pl.when(pl.program_id(2) == pl.num_programs(2) - 1)
    def _():
        o_ref[...] = acc_ref[...].astype(o_ref.dtype)


# ------------------------------ JAX wrapper -------------------------------

def _pick_tile(dim, pref, unit):
    """Largest tile <= pref that divides dim and respects the (8,128) rule,
    falling back to the full dimension (always legal)."""
    t = min(pref, dim)
    if dim % t == 0 and t % unit == 0:
        return t
    return dim


def proj_learner_forward(x, proj, *, tm=256, tn=256, tk=512):
    """ProjLearner.forward: returns x @ proj (or x unchanged if proj is None).

    x:    (..., K)  -- any number of leading dims
    proj: (K, N)
    """
    if proj is None:
        return x

    *lead, K = x.shape
    Kw, N = proj.shape
    assert K == Kw, f"inner dims mismatch: {K} vs {Kw}"

    # Fold every leading dim into the M (sublane) dimension: one big matmul.
    M = 1
    for d in lead:
        M *= d
    x2 = x.reshape(M, K)

    tm_ = _pick_tile(M, tm, 8)      # sublane tile (second-to-last dim)
    tn_ = _pick_tile(N, tn, 128)    # lane tile (keep output lane-dense)
    tk_ = _pick_tile(K, tk, 128)    # reduction tile

    grid = (M // tm_, N // tn_, K // tk_)

    grid_spec = pltpu.PrefetchScalarGridSpec(
        num_scalar_prefetch=0,
        grid=grid,
        in_specs=[
            pl.BlockSpec((tm_, tk_), lambda i, j, k: (i, k)),
            pl.BlockSpec((tk_, tn_), lambda i, j, k: (k, j)),
        ],
        out_specs=pl.BlockSpec((tm_, tn_), lambda i, j, k: (i, j)),
        scratch_shapes=[pltpu.VMEM((tm_, tn_), jnp.float32)],
    )

    out2 = pl.pallas_call(
        _proj_kernel,
        grid_spec=grid_spec,
        out_shape=jax.ShapeDtypeStruct((M, N), x.dtype),
        compiler_params=pltpu.CompilerParams(
            dimension_semantics=("parallel", "parallel", "arbitrary")),
    )(x2, proj)

    return out2.reshape(*lead, N)


# ---------------------------- pure-JAX reference ---------------------------

def proj_learner_reference(x, proj):
    if proj is None:
        return x
    return x @ proj


# ---------------------------------- main -----------------------------------

if __name__ == "__main__":
    # Small shapes consistent with the module: x are CLIP visual features
    # (batch, tokens, width) and proj maps width -> output_dim.
    B = 2          # batch
    L = 16         # token / sequence length
    width = 256    # clip_model.visual width (transformer dim)
    out_dim = 128  # clip_model.visual.output_dim (lane-dense: multiple of 128)

    key = jax.random.PRNGKey(0)
    kx, kp = jax.random.split(key)

    x = jax.random.normal(kx, (B, L, width), jnp.float32)
    proj = 0.02 * jax.random.normal(kp, (width, out_dim), jnp.float32)

    fwd = jax.jit(functools.partial(proj_learner_forward))
    y = fwd(x, proj)
    jax.block_until_ready(y)

    # sanity check against pure-JAX reference
    y_ref = proj_learner_reference(x, proj)
    assert y.shape == (B, L, out_dim)
    assert jnp.allclose(y, y_ref, atol=1e-4, rtol=1e-4)

    # the `proj is None` passthrough branch of ProjLearner.forward
    y_none = proj_learner_forward(x, None)
    assert y_none is x

    print("KERNEL_OK")
</pallas_src>

<mosaic_0001>
module attributes {stable_mosaic.version = 11 : i64} {
  func.func @_proj_kernel(%arg0: i32, %arg1: i32, %arg2: i32, %arg3: memref<32x256xf32, #tpu.memory_space<vmem>>, %arg4: memref<256x128xf32, #tpu.memory_space<vmem>>, %arg5: memref<32x128xf32, #tpu.memory_space<vmem>>, %arg6: memref<32x128xf32, #tpu.memory_space<vmem>>) attributes {dimension_semantics = [#tpu.dimension_semantics<parallel>, #tpu.dimension_semantics<parallel>, #tpu.dimension_semantics<arbitrary>], iteration_bounds = array<i64: 1, 1, 1>, scalar_prefetch = 0 : i64, scratch_operands = 1 : i64, tpu.core_type = #tpu.core_type<tc>, window_params = [{transform_indices = @transform_0, window_bounds = array<i64: 32, 256>}, {transform_indices = @transform_1, window_bounds = array<i64: 256, 128>}, {transform_indices = @transform_2, window_bounds = array<i64: 32, 128>}]} {
    %c0_i32 = arith.constant 0 : i32
    %0 = arith.cmpi eq, %arg2, %c0_i32 : i32
    %1 = arith.extui %0 : i1 to i32
    %c0_i32_0 = arith.constant 0 : i32
    %2 = arith.cmpi ne, %1, %c0_i32_0 : i32
    scf.if %2 {
      %cst_10 = arith.constant 0.000000e+00 : f32
      %12 = vector.broadcast %cst_10 : f32 to vector<32x128xf32>
      %c0_11 = arith.constant 0 : index
      %c0_12 = arith.constant 0 : index
      %13 = vector.load %arg6[%c0_11, %c0_12] : memref<32x128xf32, #tpu.memory_space<vmem>>, vector<32x128xf32>
      tpu.vector_store %arg6[%c0_11, %c0_12], %12 {strides = array<i32>} : memref<32x128xf32, #tpu.memory_space<vmem>>, vector<32x128xf32>,
    } else {
    }
    %c0 = arith.constant 0 : index
    %c0_1 = arith.constant 0 : index
    %3 = vector.load %arg6[%c0, %c0_1] : memref<32x128xf32, #tpu.memory_space<vmem>>, vector<32x128xf32>
    %c0_2 = arith.constant 0 : index
    %c0_3 = arith.constant 0 : index
    %4 = vector.load %arg3[%c0_2, %c0_3] : memref<32x256xf32, #tpu.memory_space<vmem>>, vector<32x256xf32>
    %c0_4 = arith.constant 0 : index
    %c0_5 = arith.constant 0 : index
    %5 = vector.load %arg4[%c0_4, %c0_5] : memref<256x128xf32, #tpu.memory_space<vmem>>, vector<256x128xf32>
    %cst = arith.constant dense<0.000000e+00> : vector<32x128xf32>
    %6 = tpu.matmul %4, %5, %cst {dimension_numbers = #tpu.dot_dimension_numbers<[1], [0], [0], [1], [0, 0, 1, 1], [], []>} : vector<32x256xf32>, vector<256x128xf32>, vector<32x128xf32> -> vector<32x128xf32>
    %7 = arith.addf %3, %6 : vector<32x128xf32>
    %c0_6 = arith.constant 0 : index
    %c0_7 = arith.constant 0 : index
    %8 = vector.load %arg6[%c0_6, %c0_7] : memref<32x128xf32, #tpu.memory_space<vmem>>, vector<32x128xf32>
    tpu.vector_store %arg6[%c0_6, %c0_7], %7 {strides = array<i32>} : memref<32x128xf32, #tpu.memory_space<vmem>>, vector<32x128xf32>,
    %c0_i32_8 = arith.constant 0 : i32
    %9 = arith.cmpi eq, %arg2, %c0_i32_8 : i32
    %10 = arith.extui %9 : i1 to i32
    %c0_i32_9 = arith.constant 0 : i32
    %11 = arith.cmpi ne, %10, %c0_i32_9 : i32
    scf.if %11 {
      %c0_10 = arith.constant 0 : index
      %c0_11 = arith.constant 0 : index
      %12 = vector.load %arg6[%c0_10, %c0_11] : memref<32x128xf32, #tpu.memory_space<vmem>>, vector<32x128xf32>
      %c0_12 = arith.constant 0 : index
      %c0_13 = arith.constant 0 : index
      %13 = vector.load %arg5[%c0_12, %c0_13] : memref<32x128xf32, #tpu.memory_space<vmem>>, vector<32x128xf32>
      tpu.vector_store %arg5[%c0_12, %c0_13], %12 {strides = array<i32>} : memref<32x128xf32, #tpu.memory_space<vmem>>, vector<32x128xf32>,
    } else {
    }
    return
  }
  func.func @transform_0(%arg0: i32, %arg1: i32, %arg2: i32) -> (i32, i32) {
    %c0_i32 = arith.constant 0 : i32
    return %arg0, %arg2 : i32, i32
  }
  func.func @transform_1(%arg0: i32, %arg1: i32, %arg2: i32) -> (i32, i32) {
    %c0_i32 = arith.constant 0 : i32
    return %arg2, %arg1 : i32, i32
  }
  func.func @transform_2(%arg0: i32, %arg1: i32, %arg2: i32) -> (i32, i32) {
    %c0_i32 = arith.constant 0 : i32
    return %arg0, %arg1 : i32, i32
  }
}

</mosaic_0001>

<bundles_post_ra>
// kernel: proj_learner_forward.1
= control target key start
LH: loop header
LB: loop body
LE: loop exit
PB: predicated region body
PF: predicated region fallthrough
CT: control target
= control target key end

     0   :  { %7 = vsyncpa [#allocation4], 0  ;;  %s400_s0 = inlined_call_operand.hbm [shape: f32[32,256], index: 0, kind: input, shape index: {}]   ;;  %s401_s1 = inlined_call_operand.hbm [shape: f32[256,128], index: 1, kind: input, shape index: {}]   ;;  %s402_s2 = inlined_call_operand.hbm [shape: f32[32,128], index: 2, kind: output, shape index: {}]  }
   0x1   :  { %8 = vsyncpa [#allocation7], 0 }
   0x2   :  { %9 = vsyncpa [#allocation5], 0  ;;  %s363_s9 = smov [#allocation3]  }
   0x3   :  { %s15_s10 = sshll.u32 %s363_s9, 4  ;;  %s16_s10 = int_to_ptr.vmem [resolvable:$true] %s15_s10 }
   0x4   :  { %s305_s11 = scalar_lea.vmem %s16_s10, 1024  ;;  %p310_p1 = scmp.lt.s32.totalorder %s16_s10, %s16_s10 }
   0x5   :  { %p306_p0 = scmp.ne.s32.totalorder %s16_s10, %s305_s11  ;;  %p311_p2 = scmp.lt.s32.totalorder %s305_s11, %s305_s11 }
   0x7   :  { %p312_p3 = por %p311_p2, %p310_p1 }
   0x9   :  { %p313_p4 = pnand %p312_p3, %p306_p0 }
   0xb   :  { %316 = shalt.err (!%p313_p4)
}
   0xc   :  { %s364_s12 = smov 256   ;;  %s365_s13 = smov 16  }
   0xd   :  { %21 = dma.hbm_to_vmem [thread:$0]  %s400_s0, 1024, %s16_s10, [#allocation4], %s364_s12, %s364_s12, %s365_s13  }
   0xe   :  { %s366_s16 = smov [#allocation6]  }
   0xf   :  { %s27_s17 = sshll.u32 %s366_s16, 4  ;;  %s28_s17 = int_to_ptr.vmem [resolvable:$true] %s27_s17 }
  0x10   :  { %s325_s18 = scalar_lea.vmem %s28_s17, 4096  ;;  %p330_p6 = scmp.lt.s32.totalorder %s28_s17, %s28_s17 }
  0x11   :  { %p326_p5 = scmp.ne.s32.totalorder %s28_s17, %s325_s18  ;;  %p331_p7 = scmp.lt.s32.totalorder %s325_s18, %s325_s18 }
  0x13   :  { %p332_p8 = por %p331_p7, %p330_p6 }
  0x15   :  { %p333_p9 = pnand %p332_p8, %p326_p5 }
  0x17   :  { %336 = shalt.err (!%p333_p9)
}
  0x18   :  { %s367_s19 = smov 128   ;;  %s368_s20 = smov 8  }
  0x19   :  { %33 = dma.hbm_to_vmem [thread:$0]  %s401_s1, 4096, %s28_s17, [#allocation7], %s367_s19, %s367_s19, %s368_s20  }
  0x1a   :  { %357 = dma.done.wait [#allocation4], 1024  }
  0x1b   :  { %358 = vsyncadd [#allocation4], 4294966272 }
  0x1c   :  { %359 = dma.done.wait [#allocation7], 4096  }
  0x1d   :  { %360 = vsyncadd [#allocation7], 4294963200  ;;  %v91_v0 = vld [vmem:[#allocation6 + $0xf8] sm:$0xff]  ;;  %v90_v2 = vld [vmem:[#allocation6 + $0xf0] sm:$0xff]  ;;  %s369_s0 = smov [#allocation8]  }
  0x1e   :  { %v75_v1 = vld [vmem:[#allocation6 + $0x78] sm:$0xff]  ;;  %214 = vmatprep.subr.mxu0 %v91_v0  ;;  %258 = vmatprep.subr.mxu1 %v91_v0  ;;  %v74_v3 = vld [vmem:[#allocation6 + $0x70] sm:$0xff]  ;;  %v89_v4 = vld [vmem:[#allocation6 + $0xe8] sm:$0xff]  ;;  %s201_s1 = sshll.u32 %s369_s0, 4  ;;  %s202_s1 = int_to_ptr.vmem [resolvable:$true] %s201_s1 }
  0x1f   :  { %215 = vmatpush3.msra.mxu0 %v75_v1  ;;  %274 = vmatpush3.msra.mxu1 %v75_v1  ;;  %v73_v5 = vld [vmem:[#allocation6 + $0x68] sm:$0xff]  ;;  %v88_v6 = vld [vmem:[#allocation6 + $0xe0] sm:$0xff]  ;;  %v87_v8 = vld [vmem:[#allocation6 + $0xd8] sm:$0xff]  ;;  %s337_s23 = scalar_lea.vmem %s202_s1, 512  ;;  %p342_p11 = scmp.lt.s32.totalorder %s202_s1, %s202_s1 }
  0x20   :  { %216 = vmatprep.subr.mxu0 %v90_v2  ;;  %259 = vmatprep.subr.mxu1 %v90_v2  ;;  %v72_v7 = vld [vmem:[#allocation6 + $0x60] sm:$0xff]  ;;  %v71_v9 = vld [vmem:[#allocation6 + $0x58] sm:$0xff]  ;;  %v86_v10 = vld [vmem:[#allocation6 + $0xd0] sm:$0xff]  ;;  %p338_p10 = scmp.ne.s32.totalorder %s202_s1, %s337_s23  ;;  %p343_p12 = scmp.lt.s32.totalorder %s337_s23, %s337_s23 }
  0x21   :  { %217 = vmatpush3.msra.mxu0 %v74_v3  ;;  %275 = vmatpush3.msra.mxu1 %v74_v3  ;;  %v70_v11 = vld [vmem:[#allocation6 + $0x50] sm:$0xff]  ;;  %v85_v12 = vld [vmem:[#allocation6 + $0xc8] sm:$0xff]  ;;  %v84_v14 = vld [vmem:[#allocation6 + $0xc0] sm:$0xff] }
  0x22   :  { %218 = vmatprep.subr.mxu0 %v89_v4  ;;  %260 = vmatprep.subr.mxu1 %v89_v4  ;;  %v69_v13 = vld [vmem:[#allocation6 + $0x48] sm:$0xff]  ;;  %v68_v15 = vld [vmem:[#allocation6 + $0x40] sm:$0xff]  ;;  %v83_v16 = vld [vmem:[#allocation6 + $0xb8] sm:$0xff]  ;;  %p344_p13 = por %p343_p12, %p342_p11 }
  0x23   :  { %219 = vmatpush3.msra.mxu0 %v73_v5  ;;  %276 = vmatpush3.msra.mxu1 %v73_v5  ;;  %v67_v17 = vld [vmem:[#allocation6 + $0x38] sm:$0xff]  ;;  %v82_v18 = vld [vmem:[#allocation6 + $0xb0] sm:$0xff]  ;;  %v81_v20 = vld [vmem:[#allocation6 + $0xa8] sm:$0xff] }
  0x24   :  { %220 = vmatprep.subr.mxu0 %v88_v6  ;;  %261 = vmatprep.subr.mxu1 %v88_v6  ;;  %v66_v19 = vld [vmem:[#allocation6 + $0x30] sm:$0xff]  ;;  %v65_v21 = vld [vmem:[#allocation6 + $0x28] sm:$0xff]  ;;  %v80_v22 = vld [vmem:[#allocation6 + $0xa0] sm:$0xff]  ;;  %p345_p0 = pnand %p344_p13, %p338_p10 }
  0x25   :  { %221 = vmatpush3.msra.mxu0 %v72_v7  ;;  %277 = vmatpush3.msra.mxu1 %v72_v7  ;;  %v64_v23 = vld [vmem:[#allocation6 + $0x20] sm:$0xff]  ;;  %v79_v24 = vld [vmem:[#allocation6 + $0x98] sm:$0xff]  ;;  %v78_v26 = vld [vmem:[#allocation6 + $0x90] sm:$0xff] }
  0x26   :  { %222 = vmatprep.subr.mxu0 %v87_v8  ;;  %262 = vmatprep.subr.mxu1 %v87_v8  ;;  %v63_v25 = vld [vmem:[#allocation6 + $0x18] sm:$0xff]  ;;  %v62_v27 = vld [vmem:[#allocation6 + $0x10] sm:$0xff]  ;;  %v77_v28 = vld [vmem:[#allocation6 + $0x88] sm:$0xff] }
  0x27   :  { %223 = vmatpush3.msra.mxu0 %v71_v9  ;;  %278 = vmatpush3.msra.mxu1 %v71_v9  ;;  %v61_v29 = vld [vmem:[#allocation6 + $0x8] sm:$0xff]  ;;  %v76_v30 = vld [vmem:[#allocation6 + $0x80] sm:$0xff]  ;;  %v55_v36 = vld [vmem:[#allocation3 + $0x18] sm:$0xff] }
  0x28   :  { %224 = vmatprep.subr.mxu0 %v86_v10  ;;  %263 = vmatprep.subr.mxu1 %v86_v10  ;;  %v60_v31 = vld [vmem:[#allocation6] sm:$0xff]  ;;  %v53_v32 = vld [vmem:[#allocation3 + $0x8] sm:$0xff]  ;;  %v59_v37 = vld [vmem:[#allocation3 + $0x38] sm:$0xff] }
  0x29   :  { %225 = vmatpush3.msra.mxu0 %v70_v11  ;;  %279 = vmatpush3.msra.mxu1 %v70_v11  ;;  %v57_v33 = vld [vmem:[#allocation3 + $0x28] sm:$0xff]  ;;  %v52_v34 = vld [vmem:[#allocation3] sm:$0xff]  ;;  %v54_v38 = vld [vmem:[#allocation3 + $0x10] sm:$0xff] }
  0x2a   :  { %226 = vmatprep.subr.mxu0 %v85_v12  ;;  %264 = vmatprep.subr.mxu1 %v85_v12  ;;  %v56_v35 = vld [vmem:[#allocation3 + $0x20] sm:$0xff]  ;;  %v58_v39 = vld [vmem:[#allocation3 + $0x30] sm:$0xff] }
  0x2b   :  { %227 = vmatpush3.msra.mxu0 %v69_v13  ;;  %280 = vmatpush3.msra.mxu1 %v69_v13 }
  0x2c   :  { %228 = vmatprep.subr.mxu0 %v84_v14  ;;  %265 = vmatprep.subr.mxu1 %v84_v14 }
  0x2d   :  { %229 = vmatpush3.msra.mxu0 %v68_v15  ;;  %281 = vmatpush3.msra.mxu1 %v68_v15 }
  0x2e   :  { %230 = vmatprep.subr.mxu0 %v83_v16  ;;  %266 = vmatprep.subr.mxu1 %v83_v16 }
  0x2f   :  { %231 = vmatpush3.msra.mxu0 %v67_v17  ;;  %282 = vmatpush3.msra.mxu1 %v67_v17 }
  0x30   :  { %232 = vmatprep.subr.mxu0 %v82_v18  ;;  %267 = vmatprep.subr.mxu1 %v82_v18 }
  0x31   :  { %233 = vmatpush3.msra.mxu0 %v66_v19  ;;  %283 = vmatpush3.msra.mxu1 %v66_v19 }
  0x32   :  { %234 = vmatprep.subr.mxu0 %v81_v20  ;;  %268 = vmatprep.subr.mxu1 %v81_v20 }
  0x33   :  { %235 = vmatpush3.msra.mxu0 %v65_v21  ;;  %284 = vmatpush3.msra.mxu1 %v65_v21 }
  0x34   :  { %236 = vmatprep.subr.mxu0 %v80_v22  ;;  %269 = vmatprep.subr.mxu1 %v80_v22 }
  0x35   :  { %237 = vmatpush3.msra.mxu0 %v64_v23  ;;  %285 = vmatpush3.msra.mxu1 %v64_v23 }
  0x36   :  { %238 = vmatprep.subr.mxu0 %v79_v24  ;;  %270 = vmatprep.subr.mxu1 %v79_v24 }
  0x37   :  { %239 = vmatpush3.msra.mxu0 %v63_v25  ;;  %286 = vmatpush3.msra.mxu1 %v63_v25 }
  0x38   :  { %240 = vmatprep.subr.mxu0 %v78_v26  ;;  %271 = vmatprep.subr.mxu1 %v78_v26 }
  0x39   :  { %241 = vmatpush3.msra.mxu0 %v62_v27  ;;  %287 = vmatpush3.msra.mxu1 %v62_v27 }
  0x3a   :  { %242 = vmatprep.subr.mxu0 %v77_v28  ;;  %272 = vmatprep.subr.mxu1 %v77_v28 }
  0x3b   :  { %243 = vmatpush3.msra.mxu0 %v61_v29  ;;  %288 = vmatpush3.msra.mxu1 %v61_v29 }
  0x3c   :  { %244 = vmatprep.subr.mxu0 %v76_v30  ;;  %273 = vmatprep.subr.mxu1 %v76_v30 }
  0x3d   :  { %245 = vmatpush3.msra.mxu0 %v60_v31  ;;  %289 = vmatpush3.msra.mxu1 %v60_v31 }
  0x3e   :  { %156 = vmatprep.mubr.f32.mxu0 %v53_v32  ;;  %166 = vmatprep.mubr.f32.mxu1 %v57_v33 }
  0x3f   :  { %157 = vmatmul.mubr.f32.vlgmr.msra.gmra.mxu0 %v52_v34  ;;  %167 = vmatmul.mubr.f32.vlgmr.msra.gmra.mxu1 %v56_v35 }
  0x40   :  { %161 = vmatprep.mubr.f32.mxu0 %v55_v36  ;;  %171 = vmatprep.mubr.f32.mxu1 %v59_v37 }
  0x43   :  { %162 = vmatmul.mubr.f32.gmra.mxu0 %v54_v38  ;;  %172 = vmatmul.mubr.f32.gmra.mxu1 %v58_v39 }
  0xff   :  { %v246_v40 = vpop.f32.mrf.mxu0  ;;  %v252_v41 = vpop.f32.mrf.mxu1 }
 0x101   :  { %v247_v42 = vpop.f32.mrf.mxu0  ;;  %v253_v43 = vpop.f32.mrf.mxu1 }
 0x102   :  { %v248_v44 = vadd.f32 %v247_v42, %v246_v40  ;;  %v254_v45 = vadd.f32 %v253_v43, %v252_v41 }
 0x103   :  { %v249_v46 = vpop.f32.mrf.mxu0  ;;  %v255_v47 = vpop.f32.mrf.mxu1 }
 0x104   :  { %192 = vst [vmem:[#allocation8] sm:$0xff] %v248_v44  ;;  %194 = vst [vmem:[#allocation8 + $0x10] sm:$0xff] %v254_v45 }
 0x105   :  { %v250_v48 = vpop.f32.mrf.mxu0  ;;  %v256_v49 = vpop.f32.mrf.mxu1 }
 0x106   :  { %v251_v50 = vadd.f32 %v250_v48, %v249_v46  ;;  %v257_v51 = vadd.f32 %v256_v49, %v255_v47 }
 0x108   :  { %193 = vst [vmem:[#allocation8 + $0x8] sm:$0xff] %v251_v50  ;;  %195 = vst [vmem:[#allocation8 + $0x18] sm:$0xff] %v257_v51 }
 0x109   :  { %348 = shalt.err (!%p345_p0)
}
 0x10a   :  { %207 = dma.vmem_to_hbm [thread:$0]  %s202_s1, 512, %s402_s2, [#allocation5], %s367_s19, %s367_s19, %s368_s20  }
 0x10b   :  { %361 = dma.done.wait [#allocation5], 512  }
 0x10c   :  { %362 = vsyncadd [#allocation5], 4294966784 }
 0x10d   :  { %211 = vsyncpa [#allocation4], 1 }
 0x10e   :  { %212 = vsyncpa [#allocation7], 1 }
 0x10f   :  { %213 = vsyncpa [#allocation5], 1 }

</bundles_post_ra>
